<compile_context>
chip_gen: v5e
topology: v5e:2x2
jax: 0.10.0
libtpu: 0.0.40
codegen_flags: <defaults>
</compile_context>

<pallas_src>
import functools

import jax
import jax.numpy as jnp
from jax.experimental import pallas as pl
from jax.experimental.pallas import tpu as pltpu

_TWO_PI = 6.283185307179586
_U32_GOLDEN = 0x9E3779B9
_U32_M1 = 0x7FEB352D
_U32_M2 = 0x846CA68B


def _hash_to_uniform(counter_u32, seed_u32):
    """Counter-based stateless PRNG (murmur-style finalizer) -> uniform in (0,1)."""
    x = (counter_u32 + seed_u32) * jnp.uint32(_U32_GOLDEN)
    x = x ^ (x >> 16)
    x = x * jnp.uint32(_U32_M1)
    x = x ^ (x >> 15)
    x = x * jnp.uint32(_U32_M2)
    x = x ^ (x >> 16)
    # Top 24 bits -> float32 uniform strictly inside (0, 1)  (log-safe).
    mant = (x >> 8).astype(jnp.int32).astype(jnp.float32)
    return (mant + 0.5) * jnp.float32(1.0 / (1 << 24))


def _gaussian_noise_kernel(seed_ref, x_ref, o_ref, *, sigma):
    pid = pl.program_id(0)
    tr, w = x_ref.shape          # static block shape
    hw = w // 2                  # lane-split for the two Box-Muller legs

    seed_u = seed_ref[0].astype(jnp.uint32)

    # Unique per-element counter over the left-half lane slab of this block.
    row = jax.lax.broadcasted_iota(jnp.int32, (tr, hw), 0)
    col = jax.lax.broadcasted_iota(jnp.int32, (tr, hw), 1)
    base = ((pid * tr + row) * hw + col).astype(jnp.uint32)

    # Two independent uniform streams (counters 2*base and 2*base + 1).
    u1 = _hash_to_uniform(base * jnp.uint32(2), seed_u)
    u2 = _hash_to_uniform(base * jnp.uint32(2) + jnp.uint32(1), seed_u)

    # Box-Muller; use BOTH legs so log/sqrt/PRNG cost is halved per element.
    r = jnp.sqrt(-2.0 * jnp.log(u1))
    theta = _TWO_PI * u2
    z_cos = r * jnp.cos(theta)
    z_sin = r * jnp.sin(theta)

    sig = jnp.float32(sigma)

    # Left half of the lane dimension.
    n_l = jnp.where(z_cos < sig, jnp.float32(-1.0), z_cos)
    x_l = x_ref[:, 0:hw].astype(jnp.float32)
    o_ref[:, 0:hw] = jnp.clip(x_l + n_l, -1.0, 1.0).astype(o_ref.dtype)

    # Right half of the lane dimension.
    n_r = jnp.where(z_sin < sig, jnp.float32(-1.0), z_sin)
    x_r = x_ref[:, hw:w].astype(jnp.float32)
    o_ref[:, hw:w] = jnp.clip(x_r + n_r, -1.0, 1.0).astype(o_ref.dtype)


def gaussian_noise(x, *, seed=0, sigma=0.1, training=True):
    """JAX/Pallas equivalent of GaussianNoise.forward."""
    if (not training) or sigma == 0:
        return x

    orig_shape = x.shape
    orig_dtype = x.dtype
    total = x.size

    # Widest lane-dense slab width that avoids padding if possible.
    width = 128
    for w in (1024, 512, 256, 128):
        if total % w == 0:
            width = w
            break

    xf = x.reshape(-1)
    pad = (-total) % width
    if pad:  # only when unavoidable (ragged tail)
        xf = jnp.pad(xf, (0, pad))
    rows = xf.size // width
    x2 = xf.reshape(rows, width)

    # ~1 MiB f32 tiles; (in + out) x double-buffering ~= 4 MiB VMEM,
    # comfortably within v7x's 64 MiB / default scoped limits.
    target_rows = max(8, (1 << 18) // width)   # multiple of 8 for width <= 1024
    block_rows = rows if rows <= target_rows else target_rows
    grid = (pl.cdiv(rows, block_rows),)

    seed_arr = jnp.asarray([seed], dtype=jnp.int32)

    out2 = pl.pallas_call(
        functools.partial(_gaussian_noise_kernel, sigma=float(sigma)),
        out_shape=jax.ShapeDtypeStruct((rows, width), orig_dtype),
        grid=grid,
        in_specs=[
            pl.BlockSpec(memory_space=pltpu.MemorySpace.SMEM),      # seed scalar
            pl.BlockSpec((block_rows, width), lambda i: (i, 0)),    # x tiles
        ],
        out_specs=pl.BlockSpec((block_rows, width), lambda i: (i, 0)),
        compiler_params=pltpu.CompilerParams(
            dimension_semantics=("parallel",),      # shard tiles across v7x's 2 TCs
            vmem_limit_bytes=32 * 1024 * 1024,
        ),
    )(seed_arr, x2)

    out = out2.reshape(-1)
    if pad:
        out = out[:total]
    return out.reshape(orig_shape)


if __name__ == "__main__":
    key = jax.random.PRNGKey(0)
    # Small NCHW input consistent with a conv-net feature map.
    x = jax.random.normal(key, (2, 4, 16, 16), dtype=jnp.float32)

    y = gaussian_noise(x, seed=0, sigma=0.1, training=True)
    y = jax.block_until_ready(y)

    # Sanity checks on the reproduced semantics.
    assert y.shape == x.shape and y.dtype == x.dtype
    assert bool(jnp.all(y >= -1.0)) and bool(jnp.all(y <= 1.0))

    # Eval mode / sigma == 0 is identity.
    y_eval = jax.block_until_ready(gaussian_noise(x, training=False))
    assert bool(jnp.all(y_eval == x))

    print("KERNEL_OK")
</pallas_src>

<mosaic_0001>
module attributes {stable_mosaic.version = 11 : i64} {
  func.func @_gaussian_noise_kernel(%arg0: i32, %arg1: memref<1xi32, #tpu.memory_space<smem>>, %arg2: memref<2x1024xf32, #tpu.memory_space<vmem>>, %arg3: memref<2x1024xf32, #tpu.memory_space<vmem>>) attributes {dimension_semantics = [#tpu.dimension_semantics<parallel>], iteration_bounds = array<i64: 1>, scalar_prefetch = 0 : i64, scratch_operands = 0 : i64, tpu.core_type = #tpu.core_type<tc>, window_params = [{transform_indices = @transform_0, window_bounds = array<i64: 1>}, {transform_indices = @transform_1, window_bounds = array<i64: 2, 1024>}, {transform_indices = @transform_2, window_bounds = array<i64: 2, 1024>}]} {
    %c0 = arith.constant 0 : index
    %0 = memref.load %arg1[%c0] : memref<1xi32, #tpu.memory_space<smem>>
    %1 = tpu.iota {dimensions = array<i32: 0>} : vector<2x512xi32>
    %2 = tpu.iota {dimensions = array<i32: 1>} : vector<2x512xi32>
    %c2_i32 = arith.constant 2 : i32
    %3 = arith.muli %arg0, %c2_i32 : i32
    %4 = vector.broadcast %3 : i32 to vector<2x512xi32>
    %5 = arith.addi %4, %1 : vector<2x512xi32>
    %c512_i32 = arith.constant 512 : i32
    %6 = vector.broadcast %c512_i32 : i32 to vector<2x512xi32>
    %7 = arith.muli %5, %6 : vector<2x512xi32>
    %8 = arith.addi %7, %2 : vector<2x512xi32>
    %c2_i32_0 = arith.constant 2 : i32
    %9 = vector.broadcast %c2_i32_0 : i32 to vector<2x512xi32>
    %10 = arith.muli %8, %9 : vector<2x512xi32>
    %11 = vector.broadcast %0 : i32 to vector<2x512xi32>
    %12 = arith.addi %10, %11 : vector<2x512xi32>
    %c-1640531527_i32 = arith.constant -1640531527 : i32
    %13 = vector.broadcast %c-1640531527_i32 : i32 to vector<2x512xi32>
    %14 = arith.muli %12, %13 : vector<2x512xi32>
    %c16_i32 = arith.constant 16 : i32
    %15 = vector.broadcast %c16_i32 : i32 to vector<2x512xi32>
    %16 = arith.shrui %14, %15 : vector<2x512xi32>
    %17 = arith.xori %14, %16 : vector<2x512xi32>
    %c2146121005_i32 = arith.constant 2146121005 : i32
    %18 = vector.broadcast %c2146121005_i32 : i32 to vector<2x512xi32>
    %19 = arith.muli %17, %18 : vector<2x512xi32>
    %c15_i32 = arith.constant 15 : i32
    %20 = vector.broadcast %c15_i32 : i32 to vector<2x512xi32>
    %21 = arith.shrui %19, %20 : vector<2x512xi32>
    %22 = arith.xori %19, %21 : vector<2x512xi32>
    %c-2073254261_i32 = arith.constant -2073254261 : i32
    %23 = vector.broadcast %c-2073254261_i32 : i32 to vector<2x512xi32>
    %24 = arith.muli %22, %23 : vector<2x512xi32>
    %c16_i32_1 = arith.constant 16 : i32
    %25 = vector.broadcast %c16_i32_1 : i32 to vector<2x512xi32>
    %26 = arith.shrui %24, %25 : vector<2x512xi32>
    %27 = arith.xori %24, %26 : vector<2x512xi32>
    %c8_i32 = arith.constant 8 : i32
    %28 = vector.broadcast %c8_i32 : i32 to vector<2x512xi32>
    %29 = arith.shrui %27, %28 : vector<2x512xi32>
    %30 = arith.sitofp %29 : vector<2x512xi32> to vector<2x512xf32>
    %cst = arith.constant 5.000000e-01 : f32
    %31 = vector.broadcast %cst : f32 to vector<2x512xf32>
    %32 = arith.addf %30, %31 : vector<2x512xf32>
    %cst_2 = arith.constant 5.96046448E-8 : f32
    %33 = vector.broadcast %cst_2 : f32 to vector<2x512xf32>
    %34 = arith.mulf %32, %33 : vector<2x512xf32>
    %c2_i32_3 = arith.constant 2 : i32
    %35 = vector.broadcast %c2_i32_3 : i32 to vector<2x512xi32>
    %36 = arith.muli %8, %35 : vector<2x512xi32>
    %c1_i32 = arith.constant 1 : i32
    %37 = vector.broadcast %c1_i32 : i32 to vector<2x512xi32>
    %38 = arith.addi %36, %37 : vector<2x512xi32>
    %39 = vector.broadcast %0 : i32 to vector<2x512xi32>
    %40 = arith.addi %38, %39 : vector<2x512xi32>
    %c-1640531527_i32_4 = arith.constant -1640531527 : i32
    %41 = vector.broadcast %c-1640531527_i32_4 : i32 to vector<2x512xi32>
    %42 = arith.muli %40, %41 : vector<2x512xi32>
    %c16_i32_5 = arith.constant 16 : i32
    %43 = vector.broadcast %c16_i32_5 : i32 to vector<2x512xi32>
    %44 = arith.shrui %42, %43 : vector<2x512xi32>
    %45 = arith.xori %42, %44 : vector<2x512xi32>
    %c2146121005_i32_6 = arith.constant 2146121005 : i32
    %46 = vector.broadcast %c2146121005_i32_6 : i32 to vector<2x512xi32>
    %47 = arith.muli %45, %46 : vector<2x512xi32>
    %c15_i32_7 = arith.constant 15 : i32
    %48 = vector.broadcast %c15_i32_7 : i32 to vector<2x512xi32>
    %49 = arith.shrui %47, %48 : vector<2x512xi32>
    %50 = arith.xori %47, %49 : vector<2x512xi32>
    %c-2073254261_i32_8 = arith.constant -2073254261 : i32
    %51 = vector.broadcast %c-2073254261_i32_8 : i32 to vector<2x512xi32>
    %52 = arith.muli %50, %51 : vector<2x512xi32>
    %c16_i32_9 = arith.constant 16 : i32
    %53 = vector.broadcast %c16_i32_9 : i32 to vector<2x512xi32>
    %54 = arith.shrui %52, %53 : vector<2x512xi32>
    %55 = arith.xori %52, %54 : vector<2x512xi32>
    %c8_i32_10 = arith.constant 8 : i32
    %56 = vector.broadcast %c8_i32_10 : i32 to vector<2x512xi32>
    %57 = arith.shrui %55, %56 : vector<2x512xi32>
    %58 = arith.sitofp %57 : vector<2x512xi32> to vector<2x512xf32>
    %cst_11 = arith.constant 5.000000e-01 : f32
    %59 = vector.broadcast %cst_11 : f32 to vector<2x512xf32>
    %60 = arith.addf %58, %59 : vector<2x512xf32>
    %cst_12 = arith.constant 5.96046448E-8 : f32
    %61 = vector.broadcast %cst_12 : f32 to vector<2x512xf32>
    %62 = arith.mulf %60, %61 : vector<2x512xf32>
    %63 = math.log %34 : vector<2x512xf32>
    %cst_13 = arith.constant -2.000000e+00 : f32
    %64 = vector.broadcast %cst_13 : f32 to vector<2x512xf32>
    %65 = arith.mulf %64, %63 : vector<2x512xf32>
    %66 = math.sqrt %65 : vector<2x512xf32>
    %cst_14 = arith.constant 6.28318548 : f32
    %67 = vector.broadcast %cst_14 : f32 to vector<2x512xf32>
    %68 = arith.mulf %67, %62 : vector<2x512xf32>
    %69 = math.cos %68 : vector<2x512xf32>
    %70 = arith.mulf %66, %69 : vector<2x512xf32>
    %71 = math.sin %68 : vector<2x512xf32>
    %72 = arith.mulf %66, %71 : vector<2x512xf32>
    %cst_15 = arith.constant 1.000000e-01 : f32
    %73 = vector.broadcast %cst_15 : f32 to vector<2x512xf32>
    %74 = arith.cmpf olt, %70, %73 : vector<2x512xf32>
    %cst_16 = arith.constant -1.000000e+00 : f32
    %75 = vector.broadcast %cst_16 : f32 to vector<2x512xf32>
    %76 = arith.select %74, %75, %70 : vector<2x512xi1>, vector<2x512xf32>
    %c0_17 = arith.constant 0 : index
    %c0_18 = arith.constant 0 : index
    %77 = vector.load %arg2[%c0_17, %c0_18] : memref<2x1024xf32, #tpu.memory_space<vmem>>, vector<2x512xf32>
    %78 = arith.addf %77, %76 : vector<2x512xf32>
    %cst_19 = arith.constant -1.000000e+00 : f32
    %cst_20 = arith.constant 1.000000e+00 : f32
    %79 = vector.broadcast %cst_19 : f32 to vector<2x512xf32>
    %80 = arith.maximumf %79, %78 : vector<2x512xf32>
    %81 = vector.broadcast %cst_20 : f32 to vector<2x512xf32>
    %82 = arith.minimumf %81, %80 : vector<2x512xf32>
    %c0_21 = arith.constant 0 : index
    %c0_22 = arith.constant 0 : index
    %83 = vector.load %arg3[%c0_21, %c0_22] : memref<2x1024xf32, #tpu.memory_space<vmem>>, vector<2x512xf32>
    tpu.vector_store %arg3[%c0_21, %c0_22], %82 {strides = array<i32>} : memref<2x1024xf32, #tpu.memory_space<vmem>>, vector<2x512xf32>,
    %cst_23 = arith.constant 1.000000e-01 : f32
    %84 = vector.broadcast %cst_23 : f32 to vector<2x512xf32>
    %85 = arith.cmpf olt, %72, %84 : vector<2x512xf32>
    %cst_24 = arith.constant -1.000000e+00 : f32
    %86 = vector.broadcast %cst_24 : f32 to vector<2x512xf32>
    %87 = arith.select %85, %86, %72 : vector<2x512xi1>, vector<2x512xf32>
    %c0_25 = arith.constant 0 : index
    %c512 = arith.constant 512 : index
    %88 = vector.load %arg2[%c0_25, %c512] : memref<2x1024xf32, #tpu.memory_space<vmem>>, vector<2x512xf32>
    %89 = arith.addf %88, %87 : vector<2x512xf32>
    %cst_26 = arith.constant -1.000000e+00 : f32
    %cst_27 = arith.constant 1.000000e+00 : f32
    %90 = vector.broadcast %cst_26 : f32 to vector<2x512xf32>
    %91 = arith.maximumf %90, %89 : vector<2x512xf32>
    %92 = vector.broadcast %cst_27 : f32 to vector<2x512xf32>
    %93 = arith.minimumf %92, %91 : vector<2x512xf32>
    %c0_28 = arith.constant 0 : index
    %c512_29 = arith.constant 512 : index
    %94 = vector.load %arg3[%c0_28, %c512_29] : memref<2x1024xf32, #tpu.memory_space<vmem>>, vector<2x512xf32>
    tpu.vector_store %arg3[%c0_28, %c512_29], %93 {strides = array<i32>} : memref<2x1024xf32, #tpu.memory_space<vmem>>, vector<2x512xf32>,
    return
  }
  func.func @transform_0(%arg0: i32) -> i32 {
    %c0_i32 = arith.constant 0 : i32
    %c0_i32_0 = arith.constant 0 : i32
    return %c0_i32 : i32
  }
  func.func @transform_1(%arg0: i32) -> (i32, i32) {
    %c0_i32 = arith.constant 0 : i32
    %c0_i32_0 = arith.constant 0 : i32
    return %arg0, %c0_i32 : i32, i32
  }
  func.func @transform_2(%arg0: i32) -> (i32, i32) {
    %c0_i32 = arith.constant 0 : i32
    %c0_i32_0 = arith.constant 0 : i32
    return %arg0, %c0_i32 : i32, i32
  }
}

</mosaic_0001>

<bundles_post_ra>
// kernel: tpu_custom_call.1
= control target key start
LH: loop header
LB: loop body
LE: loop exit
PB: predicated region body
PF: predicated region fallthrough
CT: control target
= control target key end

     0   :  { %8 = vsyncpa [#allocation4], 0  ;;  %s2327_s0 = inlined_call_operand.<no memory space> [shape: s32[1], index: 0, kind: input, shape index: {}]   ;;  %s2328_s1 = inlined_call_operand.hbm [shape: f32[2,1024], index: 1, kind: input, shape index: {}]   ;;  %s2329_s2 = inlined_call_operand.hbm [shape: f32[2,1024], index: 2, kind: output, shape index: {}]  }
   0x1   :  { %9 = vsyncpa [#allocation5], 0  ;;  %s17_s11 = sshll.u32 %s2328_s1, 4  ;;  %s1643_s12 = smov [#allocation3]   ;;  %s18_s11 = int_to_ptr.hbm [resolvable:$true] %s17_s11 }
   0x2   :  { %s19_s13 = sshll.u32 %s1643_s12, 4  ;;  %s20_s13 = int_to_ptr.vmem [resolvable:$true] %s19_s13 }
   0x3   :  { %22 = dma.hbm_to_vmem [thread:$0]  %s18_s11, 256, %s20_s13, [#allocation4]  }
   0x4   :  { %1639 = dma.done.wait [#allocation4], 256  }
   0x5   :  { %1640 = vsyncadd [#allocation4], 4294967040  ;;  %v28_v0 = vlaneseq  ;;  %v47_v15 = vstv %s2327_s0  ;;  %s1651_s0 = smov [#allocation6]   ;;  %s1530_s18 = sshll.u32 %s2329_s2, 4  ;;  %s1531_s18 = int_to_ptr.hbm [resolvable:$true] %s1530_s18 }
   0x6   :  { %s1528_s15 = sshll.u32 %s1651_s0, 4  ;;  %s1529_s15 = int_to_ptr.vmem [resolvable:$true] %s1528_s15 }
   0x7   :  { %v29_v1 = vshrl.u32 %v28_v0, 7  ;;  %v31_v2 = vand.u32 127, %v28_v0 }
   0x9   :  { %v32_v3 = vadd.s32 128, %v31_v2  ;;  %v33_v4 = vadd.s32 256, %v31_v2  ;;  %v34_v5 = vadd.s32 384, %v31_v2  ;;  %v38_v6 = vmul.u32 512, %v29_v1 }
   0xb   :  { %v39_v7 = vadd.s32 %v38_v6, %v31_v2  ;;  %v40_v8 = vadd.s32 %v38_v6, %v32_v3  ;;  %v41_v9 = vadd.s32 %v38_v6, %v33_v4  ;;  %v42_v10 = vadd.s32 %v38_v6, %v34_v5 }
   0xd   :  { %v43_v11 = vmul.u32 2, %v39_v7  ;;  %v44_v12 = vmul.u32 2, %v40_v8  ;;  %v45_v13 = vmul.u32 2, %v41_v9  ;;  %v46_v14 = vmul.u32 2, %v42_v10 }
   0xf   :  { %v48_v16 = vadd.s32 %v47_v15, %v43_v11  ;;  %v49_v17 = vadd.s32 %v47_v15, %v44_v12  ;;  %v50_v18 = vadd.s32 %v47_v15, %v45_v13  ;;  %v51_v19 = vadd.s32 %v47_v15, %v46_v14 }
  0x10   :  { %v104_v20 = vadd.s32 1, %v43_v11  ;;  %v105_v21 = vadd.s32 1, %v44_v12  ;;  %v106_v22 = vadd.s32 1, %v45_v13  ;;  %v107_v59 = vadd.s32 1, %v46_v14 }
  0x11   :  { %v52_v50 = vmul.u32 2654435769, %v48_v16  ;;  %v53_v55 = vmul.u32 2654435769, %v49_v17  ;;  %v54_v56 = vmul.u32 2654435769, %v50_v18 }
  0x12   :  { %v108_v23 = vadd.s32 %v104_v20, %v47_v15  ;;  %v109_v24 = vadd.s32 %v105_v21, %v47_v15  ;;  %v110_v27 = vadd.s32 %v106_v22, %v47_v15  ;;  %v55_v57 = vmul.u32 2654435769, %v51_v19 }
  0x13   :  { %v56_v58 = vshrl.u32 %v52_v50, 16  ;;  %v57_v0 = vshrl.u32 %v53_v55, 16  ;;  %v58_v1 = vshrl.u32 %v54_v56, 16  ;;  %v111_v4 = vadd.s32 %v107_v59, %v47_v15 }
  0x14   :  { %v112_v25 = vmul.u32 2654435769, %v108_v23  ;;  %v113_v26 = vmul.u32 2654435769, %v109_v24  ;;  %v114_v32 = vmul.u32 2654435769, %v110_v27 }
  0x15   :  { %v59_v2 = vshrl.u32 %v55_v57, 16  ;;  %v60_v3 = vxor.u32 %v56_v58, %v52_v50  ;;  %v61_v9 = vxor.u32 %v57_v0, %v53_v55  ;;  %v62_v10 = vxor.u32 %v58_v1, %v54_v56 }
  0x16   :  { %v116_v28 = vshrl.u32 %v112_v25, 16  ;;  %v117_v29 = vshrl.u32 %v113_v26, 16  ;;  %v118_v36 = vshrl.u32 %v114_v32, 16  ;;  %v115_v13 = vmul.u32 2654435769, %v111_v4 }
  0x17   :  { %v63_v11 = vxor.u32 %v59_v2, %v55_v57  ;;  %v64_v12 = vmul.u32 2146121005, %v60_v3  ;;  %v65_v18 = vmul.u32 2146121005, %v61_v9  ;;  %v66_v19 = vmul.u32 2146121005, %v62_v10 }
  0x18   :  { %v120_v30 = vxor.u32 %v116_v28, %v112_v25  ;;  %v121_v31 = vxor.u32 %v117_v29, %v113_v26  ;;  %v122_v41 = vxor.u32 %v118_v36, %v114_v32  ;;  %v119_v22 = vshrl.u32 %v115_v13, 16 }
  0x19   :  { %v67_v20 = vmul.u32 2146121005, %v63_v11  ;;  %v68_v21 = vshrl.u32 %v64_v12, 15  ;;  %v69_v26 = vshrl.u32 %v65_v18, 15  ;;  %v70_v27 = vshrl.u32 %v66_v19, 15 }
  0x1a   :  { %v124_v33 = vmul.u32 2146121005, %v120_v30  ;;  %v125_v34 = vmul.u32 2146121005, %v121_v31  ;;  %v126_v46 = vmul.u32 2146121005, %v122_v41  ;;  %v1682_v30 = vxor.u32 %v119_v22, %v115_v13 }
  0x1b   :  { %v71_v28 = vshrl.u32 %v67_v20, 15  ;;  %v1680_v29 = vxor.u32 %v68_v21, %v64_v12  ;;  %v1686_v36 = vxor.u32 %v69_v26, %v65_v18  ;;  %v1646_v50 = vmov 2131351028  }
  0x1c   :  { %v128_v35 = vshrl.u32 %v124_v33, 15  ;;  %v129_v37 = vshrl.u32 %v125_v34, 15  ;;  %v130_v52 = vshrl.u32 %v126_v46, 15  ;;  %v127_v41 = vmul.u32 2146121005, %v1682_v30 }
  0x1d   :  { %v77_v57 = vmul.u32 2221713035, %v1686_v36  ;;  %v1648_v58 = vmov 920167782   ;;  %v1649_v0 = vmov 1326507024  }
  0x1e   :  { %v132_v38 = vxor.u32 %v128_v35, %v124_v33  ;;  %v133_v39 = vxor.u32 %v129_v37, %v125_v34  ;;  %v134_v61 = vxor.u32 %v130_v52, %v126_v46  ;;  %v1713_v11 = vshrl.u32 %v127_v41, 15 }
  0x20   :  { %v136_v40 = vmul.u32 2221713035, %v132_v38  ;;  %v137_v42 = vmul.u32 2221713035, %v133_v39  ;;  %v138_v6 = vmul.u32 2221713035, %v134_v61  ;;  %v1688_v38 = vxor.u32 %v70_v27, %v66_v19 }
  0x21   :  { %v1690_v39 = vxor.u32 %v71_v28, %v67_v20 }
  0x22   :  { %v140_v43 = vshrl.u32 %v136_v40, 16  ;;  %v141_v44 = vshrl.u32 %v137_v42, 16  ;;  %v142_v14 = vshrl.u32 %v138_v6, 16  ;;  %v78_v61 = vmul.u32 2221713035, %v1688_v38 }
  0x23   :  { %v79_v10 = vmul.u32 2221713035, %v1690_v39 }
  0x24   :  { %v144_v45 = vxor.u32 %v140_v43, %v136_v40  ;;  %v145_v47 = vxor.u32 %v141_v44, %v137_v42  ;;  %v146_v15 = vxor.u32 %v142_v14, %v138_v6  ;;  %v76_v40 = vmul.u32 2221713035, %v1680_v29 }
  0x26   :  { %v148_v48 = vshrl.u32 %v144_v45, 8  ;;  %v149_v49 = vshrl.u32 %v145_v47, 8  ;;  %v150_v32 = vshrl.u32 %v146_v15, 8  ;;  %v1644_v45 = vmov 683565275  }
  0x27   :  { %v1645_v47 = vmov 2475754826  }
  0x28   :  { %v152_v51 = vcvt.s32.f32 %v148_v48  ;;  %v153_v53 = vcvt.s32.f32 %v149_v49  ;;  %v154_v42 = vcvt.s32.f32 %v150_v32 }
  0x2a   :  { %v156_v54 = vadd.f32 0.5, %v152_v51  ;;  %v157_v62 = vadd.f32 0.5, %v153_v53 }
  0x2c   :  { %v160_v60 = vmul.f32 5.9604645e-08, %v156_v54  ;;  %v161_v7 = vmul.f32 5.9604645e-08, %v157_v62  ;;  %v1647_v54 = vmov 2102212464   ;;  %v158_v62 = vadd.f32 0.5, %v154_v42 }
  0x2e   :  { %v1673_v63 = vmul.f32 6.2831855, %v160_v60  ;;  %v1676_v17 = vmul.f32 6.2831855, %v161_v7  ;;  %v1715_v13 = vmul.f32 5.9604645e-08, %v158_v62 }
  0x30   :  { %v231_v5 = vand.u32 2139095040, %v1673_v63  ;;  %v228_v24 = vand.u32 2147483647, %v1673_v63  ;;  %v385_v25 = vand.u32 2139095040, %v1676_v17  ;;  %v382_v6 = vand.u32 2147483647, %v1676_v17 }
  0x32   :  { %v232_v8 = vshrl.u32 %v231_v5, 23  ;;  %v235_v34 = vand.u32 8388607, %v228_v24  ;;  %v386_v35 = vshrl.u32 %v385_v25, 23  ;;  %v1720_v19 = vand.u32 8388607, %v382_v6 }
  0x34   :  { %v1540_v16 = vadd.s32 4294967169, %v232_v8  ;;  %v236_v43 = vor.u32 8388608, %v235_v34  ;;  %v1543_v44 = vadd.s32 4294967169, %v386_v35 }
  0x36   :  { %v238_v23 = vadd.s32 1, %v1540_v16  ;;  %v392_v2 = vadd.s32 1, %v1543_v44  ;;  %v1706_v5 = vshll.u32 %v236_v43, 8 }
  0x38   :  { %vm239_vm0 = vcmp.gt.s32.totalorder %v238_v23, 0  ;;  %vm393_vm4 = vcmp.gt.s32.totalorder %v392_v2, 0  ;;  %v277_v18 = vand.u32 65535, %v1706_v5  ;;  %v278_v15 = vshrl.u32 %v1706_v5, 16 }
  0x39   :  { %v240_v31 = vsel %vm239_vm0, %v238_v23, 0  ;;  %v394_v27 = vsel %vm393_vm4, %v392_v2, 0 }
  0x3a   :  { %v242_v33 = vand.u32 31, %v240_v31  ;;  %v241_v52 = vshrl.u32 %v240_v31, 5  ;;  %v396_v32 = vand.u32 31, %v394_v27 }
  0x3c   :  { %v243_v37 = vsub.s32 32, %v242_v33  ;;  %v245_v46 = vshll.u32 %v1644_v45, %v242_v33  ;;  %v248_v49 = vshll.u32 %v1645_v47, %v242_v33  ;;  %v251_v53 = vshll.u32 %v1646_v50, %v242_v33 }
  0x3d   :  { %v254_v56 = vshll.u32 %v1647_v54, %v242_v33  ;;  %v257_v60 = vshll.u32 %v1648_v58, %v242_v33  ;;  %vm260_vm1 = vcmp.lt.s32.totalorder %v241_v52, 1  ;;  %vm263_vm2 = vcmp.lt.s32.totalorder %v241_v52, 4 }
  0x3e   :  { %v246_v48 = vshrl.u32 %v1645_v47, %v243_v37  ;;  %v249_v51 = vshrl.u32 %v1646_v50, %v243_v37  ;;  %v252_v55 = vshrl.u32 %v1647_v54, %v243_v37  ;;  %v255_v59 = vshrl.u32 %v1648_v58, %v243_v37 }
  0x3f   :  { %v258_v1 = vshrl.u32 %v1649_v0, %v243_v37  ;;  %v244_v7 = vshrl.u32 %v1644_v45, %v243_v37  ;;  %vm262_vm3 = vcmp.lt.s32.totalorder %v241_v52, 3  ;;  %vm261_vm5 = vcmp.lt.s32.totalorder %v241_v52, 2 }
  0x40   :  { %v247_v3 = vor.u32 %v246_v48, %v245_v46  ;;  %v250_v4 = vor.u32 %v249_v51, %v248_v49  ;;  %v253_v8 = vor.u32 %v252_v55, %v251_v53  ;;  %v256_v9 = vor.u32 %v255_v59, %v254_v56 }
  0x41   :  { %v259_v12 = vor.u32 %v258_v1, %v257_v60  ;;  %v390_v37 = vor.u32 8388608, %v1720_v19  ;;  %v1732_v46 = vshrl.u32 %v394_v27, 5  ;;  %v1734_v53 = vsub.s32 32, %v396_v32 }
  0x42   :  { %v265_v14 = vsel %vm263_vm2, %v253_v8, 2102212464  ;;  %v268_v16 = vsel %vm260_vm1, %v247_v3, %v250_v4  ;;  %v264_v20 = vsel %vm260_vm1, %v244_v7, %v247_v3  ;;  %v269_v21 = vsel %vm263_vm2, %v256_v9, 920167782 }
  0x43   :  { %v272_v22 = vsel %vm260_vm1, %v250_v4, %v253_v8  ;;  %v266_v23 = vsel %vm262_vm3, %v250_v4, %v265_v14  ;;  %v270_v25 = vsel %vm262_vm3, %v253_v8, %v269_v21  ;;  %v273_v26 = vsel %vm263_vm2, %v259_v12, 1326507024 }
  0x44   :  { %v271_v28 = vsel %vm261_vm5, %v268_v16, %v270_v25  ;;  %v274_v31 = vsel %vm262_vm3, %v256_v9, %v273_v26  ;;  %v1730_v42 = vsel %vm261_vm5, %v264_v20, %v266_v23  ;;  %v399_v60 = vshll.u32 %v1644_v45, %v396_v32 }
  0x45   :  { %v275_v33 = vsel %vm261_vm5, %v272_v22, %v274_v31  ;;  %v301_v34 = vand.u32 65535, %v271_v28  ;;  %v302_v35 = vshrl.u32 %v271_v28, 16  ;;  %v400_v14 = vshrl.u32 %v1645_v47, %v1734_v53 }
  0x46   :  { %v279_v43 = vand.u32 65535, %v275_v33  ;;  %v280_v44 = vshrl.u32 %v275_v33, 16  ;;  %v1650_v19 = vmov 0   ;;  %v403_v31 = vshrl.u32 %v1646_v50, %v1734_v53 }
  0x47   :  { %v303_v48 = vmul.u32 %v301_v34, %v277_v18  ;;  %v304_v49 = vmul.u32 %v302_v35, %v277_v18  ;;  %v305_v51 = vmul.u32 %v301_v34, %v278_v15  ;;  %v306_v1 = vmul.u32 %v302_v35, %v278_v15 }
  0x48   :  { %v281_v55 = vmul.u32 %v279_v43, %v277_v18  ;;  %v282_v56 = vmul.u32 %v280_v44, %v277_v18  ;;  %v283_v59 = vmul.u32 %v279_v43, %v278_v15  ;;  %v284_v62 = vmul.u32 %v280_v44, %v278_v15 }
  0x49   :  { %v307_v2 = vshll.u32 %v304_v49, 16  ;;  %v309_v52 = vshll.u32 %v305_v51, 16  ;;  %v308_v7 = vshrl.u32 %v304_v49, 16  ;;  %v310_v8 = vshrl.u32 %v305_v51, 16 }
  0x4a   :  { %v285_v3 = vshll.u32 %v282_v56, 16  ;;  %v287_v4 = vshll.u32 %v283_v59, 16  ;;  %v286_v9 = vshrl.u32 %v282_v56, 16  ;;  %v288_v16 = vshrl.u32 %v283_v59, 16 }
  0x4b   :  { %vm311_vm6 = vc.u32 %v303_v48, %v307_v2  ;;  %v313_v12 = vadd.s32 %v307_v2, %v303_v48  ;;  %v402_v15 = vshll.u32 %v1645_v47, %v396_v32  ;;  %v1743_v26 = vor.u32 %v400_v14, %v399_v60 }
  0x4c   :  { %vm289_vm7 = vc.u32 %v281_v55, %v285_v3  ;;  %v291_v18 = vadd.s32 %v285_v3, %v281_v55  ;;  %v312_v20 = vsel %vm311_vm6, 1, %v1650_v19  ;;  %v405_v33 = vshll.u32 %v1646_v50, %v396_v32 }
  0x4d   :  { %v290_v21 = vsel %vm289_vm7, 1, %v1650_v19  ;;  %v314_v22 = vadd.s32 %v312_v20, %v306_v1  ;;  %vm315_vm8 = vc.u32 %v313_v12, %v309_v52  ;;  %v406_v35 = vshrl.u32 %v1647_v54, %v1734_v53 }
  0x4e   :  { %v292_v23 = vadd.s32 %v290_v21, %v284_v62  ;;  %vm293_vm9 = vc.u32 %v291_v18, %v287_v4  ;;  %v316_v25 = vsel %vm315_vm8, 1, %v1650_v19  ;;  %v408_v43 = vshll.u32 %v1647_v54, %v396_v32 }
  0x4f   :  { %v294_v27 = vsel %vm293_vm9, 1, %v1650_v19  ;;  %v318_v28 = vadd.s32 %v316_v25, %v314_v22  ;;  %v409_v44 = vshrl.u32 %v1648_v58, %v1734_v53  ;;  %v1754_v49 = vor.u32 %v403_v31, %v402_v15 }
  0x50   :  { %v296_v34 = vadd.s32 %v294_v27, %v292_v23  ;;  %v411_v51 = vshll.u32 %v1648_v58, %v396_v32  ;;  %v412_v55 = vshrl.u32 %v1649_v0, %v1734_v53  ;;  %v1759_v59 = vadd.s32 %v313_v12, %v309_v52 }
  0x51   :  { %v319_v48 = vadd.s32 %v318_v28, %v308_v7  ;;  %v410_v60 = vor.u32 %v409_v44, %v408_v43  ;;  %vm414_vm10 = vcmp.lt.s32.totalorder %v1732_v46, 1  ;;  %v321_v1 = vmul.u32 %v1706_v5, %v1730_v42 }
  0x52   :  { %v297_v56 = vadd.s32 %v296_v34, %v286_v9  ;;  %v1764_v2 = vor.u32 %v406_v35, %v405_v33  ;;  %v1766_v3 = vshll.u32 %v390_v37, 8  ;;  %v413_v32 = vor.u32 %v412_v55, %v411_v51 }
  0x53   :  { %v320_v62 = vadd.s32 %v319_v48, %v310_v8  ;;  %vm416_vm11 = vcmp.lt.s32.totalorder %v1732_v46, 3  ;;  %vm417_vm12 = vcmp.lt.s32.totalorder %v1732_v46, 4  ;;  %vm415_vm13 = vcmp.lt.s32.totalorder %v1732_v46, 2 }
  0x54   :  { %v1768_v4 = vadd.s32 %v297_v56, %v288_v16  ;;  %v422_v7 = vsel %vm414_vm10, %v1743_v26, %v1754_v49  ;;  %v423_v5 = vsel %vm417_vm12, %v410_v60, 920167782  ;;  %v80_v37 = vshrl.u32 %v76_v40, 16 }
  0x55   :  { %v324_v52 = vadd.s32 1, %v320_v62  ;;  %v81_v42 = vshrl.u32 %v77_v57, 16  ;;  %v82_v8 = vshrl.u32 %v78_v61, 16  ;;  %v1788_v9 = vmul.f32 6.2831855, %v1715_v13 }
  0x56   :  { %vm323_vm14 = vc.u32 %v1768_v4, %v1759_v59  ;;  %v424_v14 = vsel %vm416_vm11, %v1764_v2, %v423_v5  ;;  %v426_v16 = vsel %vm414_vm10, %v1754_v49, %v1764_v2  ;;  %v427_v21 = vsel %vm417_vm12, %v413_v32, 1326507024 }
  0x57   :  { %v325_v12 = vsel %vm323_vm14, %v324_v52, %v320_v62  ;;  %v425_v20 = vsel %vm415_vm13, %v422_v7, %v424_v14  ;;  %v431_v13 = vand.u32 65535, %v1766_v3  ;;  %v428_v22 = vsel %vm416_vm11, %v410_v60, %v427_v21 }
  0x58   :  { %v326_v18 = vadd.s32 %v325_v12, %v321_v1  ;;  %v432_v15 = vshrl.u32 %v1766_v3, 16  ;;  %v455_v23 = vand.u32 65535, %v425_v20  ;;  %v456_v25 = vshrl.u32 %v425_v20, 16 }
  0x59   :  { %v83_v27 = vshrl.u32 %v79_v10, 16  ;;  %v1810_v28 = vxor.u32 %v1713_v11, %v127_v41  ;;  %v429_v33 = vsel %vm415_vm13, %v426_v16, %v428_v22  ;;  %v1816_v34 = vxor.u32 %v80_v37, %v76_v40 }
  0x5a   :  { %v327_v31 = vadd.s32 536870912, %v326_v18  ;;  %v433_v35 = vand.u32 65535, %v429_v33  ;;  %v434_v43 = vshrl.u32 %v429_v33, 16  ;;  %v458_v44 = vmul.u32 %v456_v25, %v431_v13 }
  0x5b   :  { %v1820_v48 = vxor.u32 %v81_v42, %v77_v57  ;;  %v457_v30 = vmul.u32 %v455_v23, %v431_v13  ;;  %v539_v41 = vand.u32 2139095040, %v1788_v9  ;;  %v459_v60 = vmul.u32 %v455_v23, %v432_v15 }
  0x5c   :  { %v1822_v51 = vshrl.u32 %v327_v31, 30  ;;  %v435_v11 = vmul.u32 %v433_v35, %v431_v13  ;;  %v436_v55 = vmul.u32 %v434_v43, %v431_v13  ;;  %v437_v56 = vmul.u32 %v433_v35, %v432_v15 }
  0x5d   :  { %v86_v29 = vxor.u32 %v82_v8, %v78_v61  ;;  %v139_v40 = vmul.u32 2221713035, %v1810_v28  ;;  %v461_v1 = vshll.u32 %v458_v44, 16  ;;  %v438_v36 = vmul.u32 %v434_v43, %v432_v15 }
  0x5e   :  { %v329_v62 = vshll.u32 %v1822_v51, 30  ;;  %v439_v57 = vshll.u32 %v436_v55, 16  ;;  %v441_v32 = vshll.u32 %v437_v56, 16  ;;  %v460_v52 = vmul.u32 %v456_v25, %v432_v15 }
  0x5f   :  { %v398_v5 = vshrl.u32 %v1644_v45, %v1734_v53  ;;  %v440_v37 = vshrl.u32 %v436_v55, 16  ;;  %v540_v42 = vshrl.u32 %v539_v41, 23  ;;  %v463_v38 = vshll.u32 %v459_v60, 16 }
  0x60   :  { %v1829_v7 = vsub.s32 %v326_v18, %v329_v62  ;;  %vm443_vm15 = vc.u32 %v435_v11, %v439_v57  ;;  %v445_v12 = vadd.s32 %v439_v57, %v435_v11  ;;  %vm465_vm0 = vc.u32 %v457_v30, %v461_v1 }
  0x61   :  { %v444_v8 = vsel %vm443_vm15, 1, %v1650_v19  ;;  %v466_v14 = vsel %vm465_vm0, 1, %v1650_v19  ;;  %v467_v18 = vadd.s32 %v461_v1, %v457_v30  ;;  %v87_v53 = vxor.u32 %v83_v27, %v79_v10 }
  0x62   :  { %vm331_vm1 = vcmp.lt.s32.totalorder %v1829_v7, 0  ;;  %v332_v61 = vsub.s32 0, %v1829_v7  ;;  %v446_v16 = vadd.s32 %v444_v8, %v438_v36  ;;  %vm447_vm2 = vc.u32 %v445_v12, %v441_v32 }
  0x63   :  { %v468_v20 = vadd.s32 %v466_v14, %v460_v52  ;;  %v419_v21 = vsel %vm417_vm12, %v1764_v2, 2102212464  ;;  %v448_v13 = vsel %vm447_vm2, 1, %v1650_v19  ;;  %v1546_v22 = vadd.s32 4294967169, %v540_v42 }
  0x64   :  { %v333_v15 = vsel %vm331_vm1, %v332_v61, %v1829_v7  ;;  %v442_v23 = vshrl.u32 %v437_v56, 16  ;;  %v450_v25 = vadd.s32 %v448_v13, %v446_v16  ;;  %vm469_vm3 = vc.u32 %v467_v18, %v463_v38 }
  0x65   :  { %v143_v28 = vshrl.u32 %v139_v40, 16  ;;  %v462_v31 = vshrl.u32 %v458_v44, 16  ;;  %v470_v33 = vsel %vm469_vm3, 1, %v1650_v19  ;;  %v546_v35 = vadd.s32 1, %v1546_v22 }
  0x66   :  { %v418_v39 = vsel %vm414_vm10, %v398_v5, %v1743_v26  ;;  %v420_v10 = vsel %vm416_vm11, %v1754_v49, %v419_v21  ;;  %v451_v2 = vadd.s32 %v450_v25, %v440_v37  ;;  %v472_v27 = vadd.s32 %v470_v33, %v468_v20 }
  0x67   :  { %v334_v43 = vclz %v333_v15  ;;  %v464_v30 = vshrl.u32 %v459_v60, 16  ;;  %vm547_vm4 = vcmp.gt.s32.totalorder %v546_v35, 0  ;;  %v1853_v11 = vadd.s32 %v467_v18, %v463_v38 }
  0x68   :  { %v1851_v41 = vadd.s32 %v451_v2, %v442_v23  ;;  %v88_v44 = vshrl.u32 %v1816_v34, 8  ;;  %v89_v55 = vshrl.u32 %v1820_v48, 8  ;;  %v421_v26 = vsel %vm415_vm13, %v418_v39, %v420_v10 }
  0x69   :  { %v473_v56 = vadd.s32 %v472_v27, %v462_v31  ;;  %v90_v62 = vshrl.u32 %v86_v29, 8  ;;  %v91_v1 = vshrl.u32 %v87_v53, 8  ;;  %v147_v49 = vxor.u32 %v143_v28, %v139_v40 }
  0x6a   :  { %v548_v36 = vsel %vm547_vm4, %v546_v35, 0  ;;  %v1541_v57 = vadd.s32 4294967294, %v334_v43  ;;  %v2331_v60 = vand.u32 2147483647, %v1788_v9  ;;  %v475_v52 = vmul.u32 %v1766_v3, %v421_v26 }
  0x6b   :  { %v474_v32 = vadd.s32 %v473_v56, %v464_v30  ;;  %vm477_vm5 = vc.u32 %v1851_v41, %v1853_v11  ;;  %v92_v34 = vcvt.s32.f32 %v88_v44  ;;  %v550_v48 = vand.u32 31, %v548_v36 }
  0x6c   :  { %v93_v37 = vcvt.s32.f32 %v89_v55  ;;  %v94_v46 = vcvt.s32.f32 %v90_v62  ;;  %v95_v42 = vcvt.s32.f32 %v91_v1  ;;  %v151_v12 = vshrl.u32 %v147_v49, 8 }
  0x6d   :  { %v478_v5 = vadd.s32 1, %v474_v32  ;;  %vm1542_vm6 = vcmp.lt.s32.totalorder %v1541_v57, 0  ;;  %v543_v40 = vand.u32 8388607, %v2331_v60  ;;  %v1865_v38 = vsub.s32 32, %v550_v48 }
  0x6e   :  { %v1867_v8 = vshrl.u32 %v548_v36, 5  ;;  %v553_v3 = vshll.u32 %v1644_v45, %v550_v48  ;;  %v556_v14 = vshll.u32 %v1645_v47, %v550_v48  ;;  %v559_v20 = vshll.u32 %v1646_v50, %v550_v48 }
  0x6f   :  { %v479_v29 = vsel %vm477_vm5, %v478_v5, %v474_v32  ;;  %v554_v16 = vshrl.u32 %v1645_v47, %v1865_v38  ;;  %v557_v18 = vshrl.u32 %v1646_v50, %v1865_v38  ;;  %v560_v53 = vshrl.u32 %v1647_v54, %v1865_v38 }
  0x70   :  { %v480_v61 = vadd.s32 %v479_v29, %v475_v52  ;;  %v155_v21 = vcvt.s32.f32 %v151_v12  ;;  %v562_v22 = vshll.u32 %v1647_v54, %v550_v48  ;;  %v563_v15 = vshrl.u32 %v1648_v58, %v1865_v38 }
  0x71   :  { %v96_v23 = vadd.f32 0.5, %v92_v34  ;;  %v1882_v25 = vsel %vm1542_vm6, 0, %v1541_v57  ;;  %v544_v28 = vor.u32 8388608, %v543_v40  ;;  %v565_v31 = vshll.u32 %v1648_v58, %v550_v48 }
  0x72   :  { %v481_v13 = vadd.s32 536870912, %v480_v61  ;;  %v1887_v35 = vor.u32 %v554_v16, %v553_v3  ;;  %v1889_v39 = vor.u32 %v557_v18, %v556_v14  ;;  %v564_v10 = vor.u32 %v563_v15, %v562_v22 }
  0x73   :  { %v1891_v2 = vor.u32 %v560_v53, %v559_v20  ;;  %v566_v27 = vshrl.u32 %v1649_v0, %v1865_v38  ;;  %vm568_vm7 = vcmp.lt.s32.totalorder %v1867_v8, 1  ;;  %vm571_vm8 = vcmp.lt.s32.totalorder %v1867_v8, 4 }
  0x74   :  { %v1885_v33 = vshrl.u32 %v481_v13, 30  ;;  %v97_v43 = vadd.f32 0.5, %v93_v37  ;;  %v159_v30 = vadd.f32 0.5, %v155_v21  ;;  %vm570_vm9 = vcmp.lt.s32.totalorder %v1867_v8, 3 }
  0x75   :  { %v98_v55 = vadd.f32 0.5, %v94_v46  ;;  %v567_v26 = vor.u32 %v566_v27, %v565_v31  ;;  %v577_v56 = vsel %vm571_vm8, %v564_v10, 920167782  ;;  %v342_v62 = vsub.s32 4294967266, %v1882_v25 }
  0x76   :  { %v483_v44 = vshll.u32 %v1885_v33, 30  ;;  %vm569_vm10 = vcmp.lt.s32.totalorder %v1867_v8, 2  ;;  %v576_v49 = vsel %vm568_vm7, %v1887_v35, %v1889_v39  ;;  %v99_v36 = vadd.f32 0.5, %v95_v42 }
  0x77   :  { %v100_v57 = vmul.f32 5.9604645e-08, %v96_v23  ;;  %v578_v32 = vsel %vm570_vm9, %v1891_v2, %v577_v56  ;;  %v1912_v52 = vshll.u32 %v544_v28, 8  ;;  %v101_v34 = vmul.f32 5.9604645e-08, %v97_v43 }
  0x78   :  { %v1902_v1 = vsub.s32 %v480_v61, %v483_v44  ;;  %v163_v5 = vmul.f32 5.9604645e-08, %v159_v30  ;;  %v322_v37 = vadd.s32 %v1759_v59, %v1768_v4  ;;  %v579_v46 = vsel %vm569_vm10, %v576_v49, %v578_v32 }
  0x79   :  { %v580_v42 = vsel %vm568_vm7, %v1889_v39, %v1891_v2  ;;  %v581_v12 = vsel %vm571_vm8, %v567_v26, 1326507024  ;;  %v338_v29 = vsub.s32 32, %v1882_v25  ;;  %v343_v40 = vadd.s32 127, %v342_v62 }
  0x7a   :  { %vm485_vm11 = vcmp.lt.s32.totalorder %v1902_v1, 0  ;;  %v486_v48 = vsub.s32 0, %v1902_v1  ;;  %v582_v3 = vsel %vm570_vm9, %v564_v10, %v581_v12  ;;  %v102_v59 = vmul.f32 5.9604645e-08, %v98_v55 }
  0x7b   :  { %v583_v14 = vsel %vm569_vm10, %v580_v42, %v582_v3  ;;  %v585_v16 = vand.u32 65535, %v1912_v52  ;;  %v586_v18 = vshrl.u32 %v1912_v52, 16  ;;  %v610_v21 = vshrl.u32 %v579_v46, 16 }
  0x7c   :  { %v487_v61 = vsel %vm485_vm11, %v486_v48, %v1902_v1  ;;  %v587_v20 = vand.u32 65535, %v583_v14  ;;  %v588_v53 = vshrl.u32 %v583_v14, 16  ;;  %v103_v13 = vmul.f32 5.9604645e-08, %v99_v36 }
  0x7d   :  { %v488_v4 = vclz %v487_v61  ;;  %1575 = vlog2.f32 %v100_v57  ;;  %v1934_v15 = vmul.f32 6.2831855, %v163_v5  ;;  %v339_v23 = vshll.u32 %v1829_v7, %v1882_v25 }
  0x7e   :  { %v340_v28 = vshrl.u32 %v322_v37, %v338_v29  ;;  %v344_v31 = vshll.u32 %v343_v40, 23  ;;  %1577 = vlog2.f32 %v101_v34  ;;  %v590_v10 = vmul.u32 %v588_v53, %v585_v16 }
  0x7f   :  { %v1544_v22 = vadd.s32 4294967294, %v488_v4  ;;  %v609_v27 = vand.u32 65535, %v579_v46  ;;  %1579 = vlog2.f32 %v102_v59  ;;  %v1938_v30 = vmul.u32 %v587_v20, %v586_v18 }
  0x80   :  { %v1940_v44 = vmul.u32 %v610_v21, %v585_v16  ;;  %v476_v55 = vadd.s32 %v1853_v11, %v1851_v41  ;;  %v589_v62 = vmul.u32 %v587_v20, %v585_v16  ;;  %1581 = vlog2.f32 %v103_v13 }
  0x81   :  { %vm1545_vm12 = vcmp.lt.s32.totalorder %v1544_v22, 0  ;;  %v341_v7 = vor.u32 %v340_v28, %v339_v23  ;;  %v345_v25 = vor.u32 4788187, %v344_v31  ;;  %v693_v49 = vand.u32 2139095040, %v1934_v15 }
  0x82   :  { %v491_v43 = vsel %vm1545_vm12, 0, %v1544_v22  ;;  %v592_v32 = vmul.u32 %v588_v53, %v586_v18  ;;  %v593_v34 = vshll.u32 %v590_v10, 16  ;;  %v611_v5 = vmul.u32 %v609_v27, %v585_v16 }
  0x83   :  { %v492_v26 = vsub.s32 32, %v491_v43  ;;  %v496_v56 = vsub.s32 4294967266, %v491_v43  ;;  %v1576_v36 = vpop.eup %1575  ;;  %v493_v48 = vshll.u32 %v1902_v1, %v491_v43  ;;  %v595_v37 = vshll.u32 %v1938_v30, 16 }
  0x84   :  { %v613_v46 = vmul.u32 %v609_v27, %v586_v18  ;;  %v615_v41 = vshll.u32 %v1940_v44, 16  ;;  %v1578_v11 = vpop.eup %1577  ;;  %vm597_vm13 = vc.u32 %v589_v62, %v593_v34  ;;  %v599_v29 = vadd.s32 %v593_v34, %v589_v62 }
  0x85   :  { %v497_v57 = vadd.s32 127, %v496_v56  ;;  %v494_v42 = vshrl.u32 %v476_v55, %v492_v26  ;;  %v1580_v40 = vpop.eup %1579  ;;  %v165_v61 = vmul.f32 0.6931472, %v1576_v36  ;;  %v346_v3 = vand.u32 2147483647, %v345_v25 }
  0x86   :  { %v348_v59 = vcvt.s32.f32 %v341_v7  ;;  %v598_v4 = vsel %vm597_vm13, 1, %v1650_v19  ;;  %v594_v14 = vshrl.u32 %v590_v10, 16  ;;  %vm601_vm14 = vc.u32 %v599_v29, %v595_v37  ;;  %v1582_v20 = vpop.eup %1581 }
  0x87   :  { %v498_v12 = vshll.u32 %v497_v57, 23  ;;  %v600_v16 = vadd.s32 %v598_v4, %v592_v32  ;;  %v614_v1 = vmul.u32 %v610_v21, %v586_v18  ;;  %v552_v53 = vshrl.u32 %v1644_v45, %v1865_v38 }
  0x88   :  { %v602_v13 = vsel %vm601_vm14, 1, %v1650_v19  ;;  %v617_v22 = vshll.u32 %v613_v46, 16  ;;  %v694_v23 = vshrl.u32 %v693_v49, 23  ;;  %v495_v28 = vor.u32 %v494_v42, %v493_v48 }
  0x89   :  { %v499_v31 = vor.u32 4788187, %v498_v12  ;;  %v604_v27 = vadd.s32 %v602_v13, %v600_v16  ;;  %vm619_vm15 = vc.u32 %v611_v5, %v615_v41  ;;  %v349_v43 = vmul.f32 %v348_v59, %v346_v3 }
  0x8a   :  { %v573_v10 = vsel %vm571_vm8, %v1891_v2, 2102212464  ;;  %v620_v55 = vsel %vm619_vm15, 1, %v1650_v19  ;;  %v621_v18 = vadd.s32 %v615_v41, %v611_v5  ;;  %v167_v21 = vmul.f32 0.6931472, %v1578_v11 }
  0x8b   :  { %v596_v26 = vshrl.u32 %v1938_v30, 16  ;;  %v605_v38 = vadd.s32 %v604_v27, %v594_v14  ;;  %v622_v56 = vadd.s32 %v620_v55, %v614_v1  ;;  %v572_v62 = vsel %vm568_vm7, %v552_v53, %v1887_v35 }
  0x8c   :  { %v616_v7 = vshrl.u32 %v1940_v44, 16  ;;  %vm623_vm0 = vc.u32 %v621_v18, %v617_v22  ;;  %v1549_v25 = vadd.s32 4294967169, %v694_v23  ;;  %v500_v49 = vand.u32 2147483647, %v499_v31 }
  0x8d   :  { %v502_v36 = vcvt.s32.f32 %v495_v28  ;;  %v574_v2 = vsel %vm570_vm9, %v1889_v39, %v573_v10  ;;  %v624_v57 = vsel %vm623_vm0, 1, %v1650_v19  ;;  %v350_v32 = vxor.u32 2147483648, %v349_v43 }
  0x8e   :  { %v618_v30 = vshrl.u32 %v613_v46, 16  ;;  %v626_v34 = vadd.s32 %v624_v57, %v622_v56  ;;  %v700_v5 = vadd.s32 1, %v1549_v25  ;;  %v169_v48 = vmul.f32 0.6931472, %v1580_v40 }
  0x8f   :  { %vm230_vm1 = vcmp.lt.s32.totalorder %v1673_v63, 0  ;;  %v1966_v35 = vadd.s32 %v605_v38, %v596_v26  ;;  %v1968_v44 = vadd.s32 %v621_v18, %v617_v22  ;;  %v1970_v37 = vmul.f32 -2.0, %v165_v61 }
  0x90   :  { %v575_v41 = vsel %vm569_vm10, %v572_v62, %v574_v2  ;;  %v627_v11 = vadd.s32 %v626_v34, %v616_v7  ;;  %vm701_vm2 = vcmp.gt.s32.totalorder %v700_v5, 0  ;;  %v1974_v39 = vmul.f32 -2.0, %v167_v21 }
  0x91   :  { %vm1978_vm3 = vcmp.le.f32.partialorder %v228_v24, 0.7853982  ;;  %v503_v42 = vmul.f32 %v502_v36, %v500_v49  ;;  %v702_v12 = vsel %vm701_vm2, %v700_v5, 0  ;;  %v351_v29 = vsel %vm230_vm1, %v350_v32, %v349_v43 }
  0x92   :  { %v628_v40 = vadd.s32 %v627_v11, %v618_v30  ;;  %v2330_v61 = vand.u32 2147483647, %v1934_v15  ;;  %v704_v8 = vand.u32 31, %v702_v12  ;;  %v171_v3 = vmul.f32 0.6931472, %v1582_v20 }
  0x93   :  { %v629_v59 = vmul.u32 %v1912_v52, %v575_v41  ;;  %vm631_vm4 = vc.u32 %v1966_v35, %v1968_v44  ;;  %v1988_v4 = vmul.f32 -2.0, %v169_v48  ;;  %1583 = vrsqrt.f32 %v1970_v37 }
  0x94   :  { %v632_v24 = vadd.s32 1, %v628_v40  ;;  %v1991_v14 = vsub.s32 32, %v704_v8  ;;  %1585 = vrsqrt.f32 %v1974_v39  ;;  %v1997_v16 = vsel %vm1978_vm3, %v1673_v63, %v351_v29 }
  0x95   :  { %vm384_vm5 = vcmp.lt.s32.totalorder %v1676_v17, 0  ;;  %v504_v52 = vxor.u32 2147483648, %v503_v42  ;;  %v697_v20 = vand.u32 8388607, %v2330_v61  ;;  %v707_v53 = vshll.u32 %v1644_v45, %v704_v8 }
  0x96   :  { %v633_v1 = vsel %vm631_vm4, %v632_v24, %v628_v40  ;;  %v710_v13 = vshll.u32 %v1645_v47, %v704_v8  ;;  %v708_v23 = vshrl.u32 %v1645_v47, %v1991_v14  ;;  %v711_v28 = vshrl.u32 %v1646_v50, %v1991_v14 }
  0x97   :  { %v634_v22 = vadd.s32 %v633_v1, %v629_v59  ;;  %v716_v31 = vshll.u32 %v1647_v54, %v704_v8  ;;  %v2009_v27 = vmul.f32 -2.0, %v171_v3  ;;  %v2011_v43 = vshrl.u32 %v702_v12, 5 }
  0x98   :  { %v713_v10 = vshll.u32 %v1646_v50, %v704_v8  ;;  %v714_v55 = vshrl.u32 %v1647_v54, %v1991_v14  ;;  %v2018_v18 = vmul.f32 %v1997_v16, %v1997_v16  ;;  %vm2022_vm6 = vcmp.le.f32.partialorder %v382_v6, 0.7853982 }
  0x99   :  { %v635_v21 = vadd.s32 536870912, %v634_v22  ;;  %v717_v26 = vshrl.u32 %v1648_v58, %v1991_v14  ;;  %v2028_v38 = vpop.eup %1583  ;;  %v505_v50 = vsel %vm384_vm5, %v504_v52, %v503_v42  ;;  %v698_v54 = vor.u32 8388608, %v697_v20 }
  0x9a   :  { %v719_v56 = vshll.u32 %v1648_v58, %v704_v8  ;;  %v720_v62 = vshrl.u32 %v1649_v0, %v1991_v14  ;;  %v2035_v7 = vpop.eup %1585  ;;  %v2039_v25 = vor.u32 %v708_v23, %v707_v53  ;;  %v2041_v49 = vor.u32 %v711_v28, %v710_v13 }
  0x9b   :  { %v2037_v6 = vshrl.u32 %v635_v21, 30  ;;  %v718_v36 = vor.u32 %v717_v26, %v716_v31  ;;  %v2043_v2 = vor.u32 %v714_v55, %v713_v10  ;;  %vm722_vm7 = vcmp.lt.s32.totalorder %v2011_v43, 1 }
  0x9c   :  { %vm725_vm8 = vcmp.lt.s32.totalorder %v2011_v43, 4  ;;  %1587 = vrsqrt.f32 %v1988_v4  ;;  %v364_v58 = vmul.f32 -0.00019511016, %v2018_v18  ;;  %vm724_vm9 = vcmp.lt.s32.totalorder %v2011_v43, 3 }
  0x9d   :  { %v637_v0 = vshll.u32 %v2037_v6, 30  ;;  %v2054_v57 = vsel %vm2022_vm6, %v1676_v17, %v505_v50  ;;  %v721_v32 = vor.u32 %v720_v62, %v719_v56  ;;  %v731_v30 = vsel %vm725_vm8, %v718_v36, 920167782 }
  0x9e   :  { %v2058_v34 = vshll.u32 %v698_v54, 8  ;;  %1589 = vrsqrt.f32 %v2009_v27  ;;  %vm723_vm10 = vcmp.lt.s32.totalorder %v2011_v43, 2  ;;  %v730_v48 = vsel %vm722_vm7, %v2039_v25, %v2041_v49 }
  0x9f   :  { %v638_v5 = vsub.s32 %v634_v22, %v637_v0  ;;  %v177_v41 = vmul.f32 %v2028_v38, %v1970_v37  ;;  %v2070_v11 = vmul.f32 %v2035_v7, %v1974_v39  ;;  %v357_v42 = vmul.f32 -0.001358992, %v2018_v18 }
  0xa0   :  { %v732_v12 = vsel %vm724_vm9, %v2043_v2, %v731_v30  ;;  %v2078_v29 = vmul.f32 %v2054_v57, %v2054_v57  ;;  %v734_v8 = vsel %vm722_vm7, %v2041_v49, %v2043_v2  ;;  %v365_v3 = vadd.f32 0.008332121, %v364_v58 }
  0xa1   :  { %vm639_vm11 = vcmp.lt.s32.totalorder %v638_v5, 0  ;;  %v640_v40 = vsub.s32 0, %v638_v5  ;;  %v733_v59 = vsel %vm723_vm10, %v730_v48, %v732_v12  ;;  %v735_v24 = vsel %vm725_vm8, %v721_v32, 1326507024 }
  0xa2   :  { %v739_v52 = vand.u32 65535, %v2058_v34  ;;  %v2089_v1 = vpop.eup %1587  ;;  %v511_v20 = vmul.f32 -0.001358992, %v2078_v29  ;;  %v736_v13 = vsel %vm724_vm9, %v718_v36, %v735_v24  ;;  %v740_v22 = vshrl.u32 %v2058_v34, 16 }
  0xa3   :  { %v641_v53 = vsel %vm639_vm11, %v640_v40, %v638_v5  ;;  %v737_v28 = vsel %vm723_vm10, %v734_v8, %v736_v13  ;;  %v763_v31 = vand.u32 65535, %v733_v59  ;;  %v764_v10 = vshrl.u32 %v733_v59, 16 }
  0xa4   :  { %v642_v23 = vclz %v641_v53  ;;  %v2097_v55 = vpop.eup %1589  ;;  %v2100_v21 = vmul.f32 %v2028_v38, %v177_v41  ;;  %v358_v26 = vadd.f32 0.041655596, %v357_v42  ;;  %v741_v50 = vand.u32 65535, %v737_v28 }
  0xa5   :  { %v742_v54 = vshrl.u32 %v737_v28, 16  ;;  %v366_v56 = vmul.f32 %v365_v3, %v2018_v18  ;;  %v630_v62 = vadd.s32 %v1968_v44, %v1966_v35  ;;  %v766_v58 = vmul.u32 %v764_v10, %v739_v52 }
  0xa6   :  { %v1547_v36 = vadd.s32 4294967294, %v642_v23  ;;  %v518_v0 = vmul.f32 -0.00019511016, %v2078_v29  ;;  %v743_v32 = vmul.u32 %v741_v50, %v739_v52  ;;  %v745_v48 = vmul.u32 %v741_v50, %v740_v22 }
  0xa7   :  { %v744_v30 = vmul.u32 %v742_v54, %v739_v52  ;;  %v512_v12 = vadd.f32 0.041655596, %v511_v20  ;;  %v765_v40 = vmul.u32 %v763_v31, %v739_v52  ;;  %v767_v41 = vmul.u32 %v763_v31, %v740_v22 }
  0xa8   :  { %vm1548_vm12 = vcmp.lt.s32.totalorder %v1547_v36, 0  ;;  %v746_v42 = vmul.u32 %v742_v54, %v740_v22  ;;  %v769_v24 = vshll.u32 %v766_v58, 16  ;;  %v749_v28 = vshll.u32 %v745_v48, 16 }
  0xa9   :  { %v645_v8 = vsel %vm1548_vm12, 0, %v1547_v36  ;;  %v747_v59 = vshll.u32 %v744_v30, 16  ;;  %v519_v35 = vadd.f32 0.008332121, %v518_v0  ;;  %v706_v44 = vshrl.u32 %v1644_v45, %v1991_v14 }
  0xaa   :  { %v646_v53 = vsub.s32 32, %v645_v8  ;;  %v647_v3 = vshll.u32 %v638_v5, %v645_v8  ;;  %v650_v13 = vsub.s32 4294967266, %v645_v8  ;;  %v768_v23 = vmul.u32 %v764_v10, %v740_v22 }
  0xab   :  { %vm751_vm13 = vc.u32 %v743_v32, %v747_v59  ;;  %v753_v52 = vadd.s32 %v747_v59, %v743_v32  ;;  %v727_v31 = vsel %vm725_vm8, %v2043_v2, 2102212464  ;;  %v748_v54 = vshrl.u32 %v744_v30, 16 }
  0xac   :  { %v648_v61 = vshrl.u32 %v630_v62, %v646_v53  ;;  %v651_v50 = vadd.s32 127, %v650_v13  ;;  %v752_v20 = vsel %vm751_vm13, 1, %v1650_v19  ;;  %v771_v5 = vshll.u32 %v767_v41, 16 }
  0xad   :  { %v754_v36 = vadd.s32 %v752_v20, %v746_v42  ;;  %vm755_vm14 = vc.u32 %v753_v52, %v749_v28  ;;  %vm773_vm15 = vc.u32 %v765_v40, %v769_v24  ;;  %v750_v0 = vshrl.u32 %v745_v48, 16 }
  0xae   :  { %v649_v8 = vor.u32 %v648_v61, %v647_v3  ;;  %v652_v60 = vshll.u32 %v651_v50, 23  ;;  %v756_v45 = vsel %vm755_vm14, 1, %v1650_v19  ;;  %v774_v14 = vsel %vm773_vm15, 1, %v1650_v19 }
  0xaf   :  { %v775_v22 = vadd.s32 %v769_v24, %v765_v40  ;;  %v758_v32 = vadd.s32 %v756_v45, %v754_v36  ;;  %v776_v59 = vadd.s32 %v774_v14, %v768_v23  ;;  %v520_v53 = vmul.f32 %v519_v35, %v2078_v29 }
  0xb0   :  { %v653_v10 = vor.u32 4788187, %v652_v60  ;;  %v656_v62 = vcvt.s32.f32 %v649_v8  ;;  %v726_v2 = vsel %vm722_vm7, %v706_v44, %v2039_v25  ;;  %v770_v61 = vshrl.u32 %v766_v58, 16 }
  0xb1   :  { %vm777_vm0 = vc.u32 %v775_v22, %v771_v5  ;;  %v728_v48 = vsel %vm724_vm9, %v2041_v49, %v727_v31  ;;  %v759_v42 = vadd.s32 %v758_v32, %v748_v54  ;;  %v359_v60 = vmul.f32 %v358_v26, %v2018_v18 }
  0xb2   :  { %v654_v30 = vand.u32 2147483647, %v653_v10  ;;  %v778_v40 = vsel %vm777_vm0, 1, %v1650_v19  ;;  %v367_v24 = vadd.f32 -0.16666654, %v366_v56  ;;  %v772_v3 = vshrl.u32 %v767_v41, 16 }
  0xb3   :  { %v780_v13 = vadd.s32 %v778_v40, %v776_v59  ;;  %v513_v28 = vmul.f32 %v512_v12, %v2078_v29  ;;  %v2124_v23 = vadd.s32 %v759_v42, %v750_v0  ;;  %v2126_v25 = vadd.s32 %v775_v22, %v771_v5 }
  0xb4   :  { %v657_v35 = vmul.f32 %v656_v62, %v654_v30  ;;  %v521_v58 = vadd.f32 -0.16666654, %v520_v53  ;;  %vm538_vm2 = vcmp.lt.s32.totalorder %v1788_v9, 0  ;;  %v729_v49 = vsel %vm723_vm10, %v726_v2, %v728_v48 }
  0xb5   :  { %v781_v44 = vadd.s32 %v780_v13, %v770_v61  ;;  %v179_v19 = vmul.f32 0.5, %v2100_v21  ;;  %v190_v26 = vmul.f32 %v2035_v7, %v2070_v11  ;;  %v352_v56 = vsub.s32 4, %v1822_v51 }
  0xb6   :  { %v658_v12 = vxor.u32 2147483648, %v657_v35  ;;  %v360_v41 = vadd.f32 -0.4999988, %v359_v60  ;;  %v368_v50 = vmul.f32 %v367_v24, %v2018_v18  ;;  %v2336_v20 = vand.u32 2147483647, %v1788_v9 }
  0xb7   :  { %v782_v43 = vadd.s32 %v781_v44, %v772_v3  ;;  %v514_v31 = vadd.f32 -0.4999988, %v513_v28  ;;  %v783_v54 = vmul.u32 %v2058_v34, %v729_v49  ;;  %vm785_vm7 = vc.u32 %v2124_v23, %v2126_v25 }
  0xb8   :  { %vm2138_vm4 = vcmp.le.f32.partialorder %v2336_v20, 0.7853982  ;;  %v659_v21 = vsel %vm538_vm2, %v658_v12, %v657_v35  ;;  %v506_v11 = vsub.s32 4, %v1885_v33  ;;  %v522_v36 = vmul.f32 %v521_v58, %v2078_v29 }
  0xb9   :  { %v786_v5 = vadd.s32 1, %v782_v43  ;;  %v191_v8 = vmul.f32 0.5, %v190_v26  ;;  %v201_v0 = vmul.f32 %v2089_v1, %v1988_v4  ;;  %v2154_v45 = vsel %vm2138_vm4, %v1788_v9, %v659_v21 }
  0xba   :  { %v180_v14 = vsub.f32 1.5, %v179_v19  ;;  %v353_v34 = vsel %vm230_vm1, %v352_v56, %v1822_v51  ;;  %v361_v22 = vmul.f32 %v360_v41, %v2018_v18  ;;  %vm183_vm8 = vcmp.eq.f32.partialorder %v1970_v37, inf }
  0xbb   :  { %v787_v10 = vsel %vm785_vm7, %v786_v5, %v782_v43  ;;  %v369_v62 = vadd.f32 1.0, %v368_v50  ;;  %v515_v32 = vmul.f32 %v514_v31, %v2078_v29  ;;  %v186_v53 = vand.u32 2147483648, %v1970_v37 }
  0xbc   :  { %v788_v59 = vadd.s32 %v787_v10, %v783_v54  ;;  %v507_v2 = vsel %vm384_vm5, %v506_v11, %v1885_v33  ;;  %v523_v61 = vadd.f32 1.0, %v522_v36  ;;  %v2168_v30 = vmul.f32 %v2154_v45, %v2154_v45 }
  0xbd   :  { %v192_v51 = vsub.f32 1.5, %v191_v8  ;;  %v213_v18 = vmul.f32 %v2097_v55, %v2009_v27  ;;  %v2174_v48 = vsel %vm1978_vm3, 0, %v353_v34  ;;  %v181_v42 = vmul.f32 %v2028_v38, %v180_v14 }
  0xbe   :  { %v789_v29 = vadd.s32 536870912, %v788_v59  ;;  %vm185_vm1 = vcmp.eq.f32.partialorder %v1970_v37, 0.0  ;;  %v202_v33 = vmul.f32 %v2089_v1, %v201_v0  ;;  %v2179_v40 = vadd.f32 1.0, %v361_v22 }
  0xbf   :  { %v372_v60 = vand.u32 3, %v2174_v48  ;;  %v2183_v24 = vmul.f32 %v369_v62, %v1997_v16  ;;  %v509_v3 = vsel %vm2022_vm6, 0, %v507_v2  ;;  %v2187_v46 = vadd.f32 1.0, %v515_v32 }
  0xc0   :  { %v2189_v13 = vshrl.u32 %v789_v29, 30  ;;  %v2192_v38 = vmul.f32 %v523_v61, %v2054_v57  ;;  %v526_v28 = vand.u32 3, %v509_v3  ;;  %v665_v35 = vmul.f32 -0.001358992, %v2168_v30 }
  0xc1   :  { %v672_v58 = vmul.f32 -0.00019511016, %v2168_v30  ;;  %v193_v49 = vmul.f32 %v2035_v7, %v192_v51  ;;  %vm195_vm3 = vcmp.eq.f32.partialorder %v1974_v39, inf  ;;  %v214_v16 = vmul.f32 %v2097_v55, %v213_v18 }
  0xc2   :  { %v791_v47 = vshll.u32 %v2189_v13, 30  ;;  %v182_v44 = vmul.f32 %v181_v42, %v1970_v37  ;;  %vm197_vm5 = vcmp.eq.f32.partialorder %v1974_v39, 0.0  ;;  %v2202_v19 = vmul.f32 0.5, %v202_v33 }
  0xc3   :  { %vm374_vm6 = vcmp.eq.s32.totalorder %v372_v60, 0  ;;  %v378_v57 = vxor.u32 2147483648, %v2179_v40  ;;  %v375_v26 = vxor.u32 2147483648, %v2183_v24  ;;  %vm377_vm9 = vcmp.eq.s32.totalorder %v372_v60, 2 }
  0xc4   :  { %v532_v7 = vxor.u32 2147483648, %v2187_v46  ;;  %v792_v56 = vsub.s32 %v788_v59, %v791_v47  ;;  %v529_v12 = vxor.u32 2147483648, %v2192_v38  ;;  %vm531_vm10 = vcmp.eq.s32.totalorder %v526_v28, 2 }
  0xc5   :  { %v666_v41 = vadd.f32 0.041655596, %v665_v35  ;;  %v673_v50 = vadd.f32 0.008332121, %v672_v58  ;;  %v194_v20 = vmul.f32 %v193_v49, %v1974_v39  ;;  %vm528_vm11 = vcmp.eq.s32.totalorder %v526_v28, 0 }
  0xc6   :  { %vm793_vm12 = vcmp.lt.s32.totalorder %v792_v56, 0  ;;  %v794_v43 = vsub.s32 0, %v792_v56  ;;  %v184_v31 = vsel %vm183_vm8, %v1970_v37, %v182_v44  ;;  %vm373_vm13 = vcmp.lt.s32.totalorder %v372_v60, 2 }
  0xc7   :  { %v379_v21 = vsel %vm377_vm9, %v378_v57, %v2183_v24  ;;  %vm527_vm14 = vcmp.lt.s32.totalorder %v526_v28, 2  ;;  %v376_v54 = vsel %vm374_vm6, %v2179_v40, %v375_v26  ;;  %v533_v11 = vsel %vm531_vm10, %v532_v7, %v2192_v38 }
  0xc8   :  { %v660_v36 = vsub.s32 4, %v2037_v6  ;;  %v795_v5 = vsel %vm793_vm12, %v794_v43, %v792_v56  ;;  %v530_v8 = vsel %vm528_vm11, %v2187_v46, %v529_v12  ;;  %v667_v0 = vmul.f32 %v666_v41, %v2168_v30 }
  0xc9   :  { %v674_v14 = vmul.f32 %v673_v50, %v2168_v30  ;;  %v796_v34 = vclz %v795_v5  ;;  %v2228_v22 = vsel %vm185_vm1, %v186_v53, %v184_v31  ;;  %v198_v10 = vand.u32 2147483648, %v1974_v39 }
  0xca   :  { %v204_v62 = vsub.f32 1.5, %v2202_v19  ;;  %v2232_v32 = vmul.f32 0.5, %v214_v16  ;;  %v196_v59 = vsel %vm195_vm3, %v1974_v39, %v194_v20  ;;  %vm371_vm15 = vweird.f32 %v1673_v63 }
  0xcb   :  { %vm525_vm0 = vweird.f32 %v1676_v17  ;;  %v1550_v2 = vadd.s32 4294967294, %v796_v34  ;;  %v380_v61 = vsel %vm373_vm13, %v376_v54, %v379_v21  ;;  %v534_v37 = vsel %vm527_vm14, %v530_v8, %v533_v11 }
  0xcc   :  { %v661_v53 = vsel %vm538_vm2, %v660_v36, %v2037_v6  ;;  %v1147_v51 = vadd.s32 3, %v509_v3  ;;  %v668_v18 = vadd.f32 -0.4999988, %v667_v0  ;;  %v675_v29 = vadd.f32 -0.16666654, %v674_v14 }
  0xcd   :  { %v784_v42 = vadd.s32 %v2126_v25, %v2124_v23  ;;  %vm1551_vm7 = vcmp.lt.s32.totalorder %v1550_v2, 0  ;;  %v199_v33 = vsel %vm197_vm5, %v198_v10, %v196_v59  ;;  %v992_v60 = vadd.s32 3, %v2174_v48 }
  0xce   :  { %v799_v35 = vsel %vm1551_vm7, 0, %v1550_v2  ;;  %v1148_v58 = vand.u32 3, %v1147_v51  ;;  %v381_v28 = vsel %vm371_vm15, nan, %v380_v61  ;;  %v535_v3 = vsel %vm525_vm0, nan, %v534_v37 }
  0xcf   :  { %v800_v49 = vsub.s32 32, %v799_v35  ;;  %v801_v16 = vshll.u32 %v792_v56, %v799_v35  ;;  %v804_v6 = vsub.s32 4294967266, %v799_v35  ;;  %v663_v23 = vsel %vm2138_vm4, 0, %v661_v53 }
  0xd0   :  { %v993_v25 = vand.u32 3, %v992_v60  ;;  %vm1150_vm2 = vcmp.eq.s32.totalorder %v1148_v58, 0  ;;  %v669_v39 = vmul.f32 %v668_v18, %v2168_v30  ;;  %v676_v47 = vmul.f32 %v675_v29, %v2168_v30 }
  0xd1   :  { %v802_v48 = vshrl.u32 %v784_v42, %v800_v49  ;;  %v805_v44 = vadd.s32 127, %v804_v6  ;;  %vm1149_vm3 = vcmp.lt.s32.totalorder %v1148_v58, 2  ;;  %vm1153_vm5 = vcmp.eq.s32.totalorder %v1148_v58, 2 }
  0xd2   :  { %vm995_vm8 = vcmp.eq.s32.totalorder %v993_v25, 0  ;;  %vm998_vm1 = vcmp.eq.s32.totalorder %v993_v25, 2  ;;  %v844_v41 = vmul.f32 %v381_v28, %v2228_v22  ;;  %v1152_v50 = vsel %vm1150_vm2, %v2187_v46, %v529_v12 }
  0xd3   :  { %v803_v19 = vor.u32 %v802_v48, %v801_v16  ;;  %v806_v56 = vshll.u32 %v805_v44, 23  ;;  %v845_v52 = vmul.f32 %v535_v3, %v199_v33  ;;  %vm994_vm4 = vcmp.lt.s32.totalorder %v993_v25, 2 }
  0xd4   :  { %v997_v20 = vsel %vm995_vm8, %v2179_v40, %v375_v26  ;;  %v1000_v30 = vsel %vm998_vm1, %v378_v57, %v2183_v24  ;;  %v1155_v54 = vsel %vm1153_vm5, %v532_v7, %v2192_v38  ;;  %v677_v11 = vadd.f32 1.0, %v676_v47 }
  0xd5   :  { %v807_v43 = vor.u32 4788187, %v806_v56  ;;  %v810_v31 = vcvt.s32.f32 %v803_v19  ;;  %v1001_v21 = vsel %vm994_vm4, %v997_v20, %v1000_v30  ;;  %v1156_v36 = vsel %vm1149_vm3, %v1152_v50, %v1155_v54 }
  0xd6   :  { %v2268_v12 = vand.u32 3, %v663_v23  ;;  %v1002_v8 = vsel %vm371_vm15, nan, %v1001_v21  ;;  %v1157_v26 = vsel %vm525_vm0, nan, %v1156_v36  ;;  %v205_v40 = vmul.f32 %v2089_v1, %v204_v62 }
  0xd7   :  { %v808_v5 = vand.u32 2147483647, %v807_v43  ;;  %v216_v24 = vsub.f32 1.5, %v2232_v32  ;;  %v814_v57 = vsub.s32 4, %v2189_v13  ;;  %v1302_v0 = vadd.s32 3, %v663_v23 }
  0xd8   :  { %v670_v46 = vadd.f32 1.0, %v669_v39  ;;  %vm1472_vm6 = vcmp.lt.f32.partialorder %v844_v41, 0.1  ;;  %vm1473_vm9 = vcmp.lt.f32.partialorder %v845_v52, 0.1  ;;  %vm207_vm10 = vcmp.eq.f32.partialorder %v1988_v4, inf }
  0xd9   :  { %v811_v38 = vmul.f32 %v810_v31, %v808_v5  ;;  %v678_v7 = vmul.f32 %v677_v11, %v2154_v45  ;;  %vm692_vm11 = vcmp.lt.s32.totalorder %v1934_v15, 0  ;;  %v1468_v63 = vmul.f32 %v1002_v8, %v2228_v22 }
  0xda   :  { %v1469_v17 = vmul.f32 %v1157_v26, %v199_v33  ;;  %vm682_vm12 = vcmp.eq.s32.totalorder %v2268_v12, 0  ;;  %vm685_vm13 = vcmp.eq.s32.totalorder %v2268_v12, 2  ;;  %v2339_v1 = vand.u32 2147483647, %v1934_v15 }
  0xdb   :  { %v812_v34 = vxor.u32 2147483648, %v811_v38  ;;  %v1303_v10 = vand.u32 3, %v1302_v0  ;;  %v1476_v62 = vsel %vm1472_vm6, -1.0, %v844_v41  ;;  %v1477_v32 = vsel %vm1473_vm9, -1.0, %v845_v52 }
  0xdc   :  { %vm2285_vm14 = vcmp.le.f32.partialorder %v2339_v1, 0.7853982  ;;  %vm1488_vm15 = vcmask 1041408   ;;  %v686_v45 = vxor.u32 2147483648, %v670_v46  ;;  %v815_v22 = vsel %vm692_vm11, %v814_v57, %v2189_v13 }
  0xdd   :  { %v813_v59 = vsel %vm692_vm11, %v812_v34, %v811_v38  ;;  %v1485_v2 = vrot.slane %v1477_v32, 6  ;;  %v683_v61 = vxor.u32 2147483648, %v678_v7  ;;  %vm1499_vm0 = vcmp.lt.f32.partialorder %v1468_v63, 0.1 }
  0xde   :  { %v816_v37 = vsel %vm2285_vm14, %v1934_v15, %v813_v59  ;;  %vm1500_vm7 = vcmp.lt.f32.partialorder %v1469_v17, 0.1  ;;  %v1503_v18 = vsel %vm1499_vm0, -1.0, %v1468_v63  ;;  %v206_v42 = vmul.f32 %v205_v40, %v1988_v4 }
  0xdf   :  { %v818_v53 = vmul.f32 %v816_v37, %v816_v37  ;;  %v2294_v51 = vsel %vm1488_vm15, %v1476_v62, %v1485_v2  ;;  %v1504_v29 = vsel %vm1500_vm7, -1.0, %v1469_v17  ;;  %vm1305_vm2 = vcmp.eq.s32.totalorder %v1303_v10, 0 }
  0xe0   :  { %vm1308_vm8 = vcmp.eq.s32.totalorder %v1303_v10, 2  ;;  %v1512_v33 = vrot.slane %v1504_v29, 6  ;;  %vm681_vm1 = vcmp.lt.s32.totalorder %v2268_v12, 2  ;;  %v817_v13 = vsel %vm2285_vm14, 0, %v815_v22 }
  0xe1   :  { %v819_v35 = vmul.f32 -0.001358992, %v818_v53  ;;  %v826_v60 = vmul.f32 -0.00019511016, %v818_v53  ;;  %v684_v58 = vsel %vm682_vm12, %v670_v46, %v683_v61  ;;  %v687_v28 = vsel %vm685_vm13, %v686_v45, %v678_v7 }
  0xe2   :  { %vm1304_vm3 = vcmp.lt.s32.totalorder %v1303_v10, 2  ;;  %v2305_v49 = vsel %vm1488_vm15, %v1503_v18, %v1512_v33  ;;  %v1307_v3 = vsel %vm1305_vm2, %v670_v46, %v683_v61  ;;  %v1310_v23 = vsel %vm1308_vm8, %v686_v45, %v678_v7  ;;  %v1480_v61 = vld [vmem:[#allocation3] sm:$0xff] }
  0xe3   :  { %v820_v16 = vadd.f32 0.041655596, %v819_v35  ;;  %v827_v6 = vadd.f32 0.008332121, %v826_v60  ;;  %v210_v25 = vand.u32 2147483648, %v1988_v4  ;;  %v1457_v39 = vadd.s32 3, %v817_v13 }
  0xe4   :  { %v208_v47 = vsel %vm207_vm10, %v1988_v4, %v206_v42  ;;  %vm209_vm5 = vcmp.eq.f32.partialorder %v1988_v4, 0.0  ;;  %v217_v19 = vmul.f32 %v2097_v55, %v216_v24  ;;  %vm679_vm4 = vweird.f32 %v1788_v9 }
  0xe5   :  { %v821_v48 = vmul.f32 %v820_v16, %v818_v53  ;;  %v828_v44 = vmul.f32 %v827_v6, %v818_v53  ;;  %v688_v56 = vsel %vm681_vm1, %v684_v58, %v687_v28  ;;  %v1311_v41 = vsel %vm1304_vm3, %v1307_v3, %v1310_v23 }
  0xe6   :  { %v211_v20 = vsel %vm209_vm5, %v210_v25, %v208_v47  ;;  %v834_v30 = vand.u32 3, %v817_v13  ;;  %v1458_v43 = vand.u32 3, %v1457_v39  ;;  %v689_v31 = vsel %vm679_vm4, nan, %v688_v56 }
  0xe7   :  { %v822_v50 = vadd.f32 -0.4999988, %v821_v48  ;;  %v829_v52 = vadd.f32 -0.16666654, %v828_v44  ;;  %v1312_v11 = vsel %vm679_vm4, nan, %v1311_v41  ;;  %v218_v4 = vmul.f32 %v217_v19, %v2009_v27 }
  0xe8   :  { %vm219_vm6 = vcmp.eq.f32.partialorder %v2009_v27, inf  ;;  %vm839_vm9 = vcmp.eq.s32.totalorder %v834_v30, 2  ;;  %v846_v9 = vmul.f32 %v689_v31, %v211_v20  ;;  %vm1463_vm10 = vcmp.eq.s32.totalorder %v1458_v43, 2 }
  0xe9   :  { %v823_v21 = vmul.f32 %v822_v50, %v818_v53  ;;  %v830_v54 = vmul.f32 %v829_v52, %v818_v53  ;;  %v1470_v12 = vmul.f32 %v1312_v11, %v211_v20  ;;  %vm221_vm11 = vcmp.eq.f32.partialorder %v2009_v27, 0.0 }
  0xea   :  { %v222_v5 = vand.u32 2147483648, %v2009_v27  ;;  %v220_v40 = vsel %vm219_vm6, %v2009_v27, %v218_v4  ;;  %vm835_vm12 = vcmp.lt.s32.totalorder %v834_v30, 2  ;;  %vm836_vm13 = vcmp.eq.s32.totalorder %v834_v30, 0 }
  0xeb   :  { %v824_v55 = vadd.f32 1.0, %v823_v21  ;;  %v831_v36 = vadd.f32 1.0, %v830_v54  ;;  %vm1460_vm14 = vcmp.eq.s32.totalorder %v1458_v43, 0  ;;  %vm1459_vm15 = vcmp.lt.s32.totalorder %v1458_v43, 2 }
  0xec   :  { %vm833_vm0 = vweird.f32 %v1934_v15  ;;  %vm1474_vm7 = vcmp.lt.f32.partialorder %v846_v9, 0.1  ;;  %vm1501_vm2 = vcmp.lt.f32.partialorder %v1470_v12, 0.1  ;;  %v223_v46 = vsel %vm221_vm11, %v222_v5, %v220_v40 }
  0xed   :  { %v832_v8 = vmul.f32 %v831_v36, %v816_v37  ;;  %v840_v26 = vxor.u32 2147483648, %v824_v55  ;;  %v1478_v34 = vsel %vm1474_vm7, -1.0, %v846_v9  ;;  %v1505_v27 = vsel %vm1501_vm2, -1.0, %v1470_v12  ;;  %v1507_v37 = vld [vmem:[#allocation3 + $0x8] sm:$0xff] }
  0xee   :  { %v1486_v32 = vrot.slane %v1478_v34, 4  ;;  %v1513_v45 = vrot.slane %v1505_v27, 4  ;;  %vm1490_vm3 = vcmask 1045508   ;;  %vm1492_vm5 = vcmask 1043456  }
  0xef   :  { %v837_v24 = vxor.u32 2147483648, %v832_v8  ;;  %v841_v57 = vsel %vm839_vm9, %v840_v26, %v832_v8  ;;  %v1465_v0 = vsel %vm1463_vm10, %v840_v26, %v832_v8 }
  0xf1   :  { %v838_v38 = vsel %vm836_vm13, %v824_v55, %v837_v24  ;;  %v1462_v7 = vsel %vm1460_vm14, %v824_v55, %v837_v24 }
  0xf2   :  { %v842_v63 = vsel %vm835_vm12, %v838_v38, %v841_v57  ;;  %v1466_v17 = vsel %vm1459_vm15, %v1462_v7, %v1465_v0 }
  0xf3   :  { %v843_v1 = vsel %vm833_vm0, nan, %v842_v63  ;;  %v1467_v14 = vsel %vm833_vm0, nan, %v1466_v17 }
  0xf4   :  { %v847_v10 = vmul.f32 %v843_v1, %v223_v46  ;;  %v1471_v62 = vmul.f32 %v1467_v14, %v223_v46 }
  0xf6   :  { %vm1475_vm8 = vcmp.lt.f32.partialorder %v847_v10, 0.1  ;;  %vm1502_vm1 = vcmp.lt.f32.partialorder %v1471_v62, 0.1 }
  0xf7   :  { %v1479_v59 = vsel %vm1475_vm8, -1.0, %v847_v10  ;;  %v1506_v15 = vsel %vm1502_vm1, -1.0, %v1471_v62 }
  0xf8   :  { %v1487_v22 = vrot.slane %v1479_v59, 2  ;;  %v1514_v2 = vrot.slane %v1506_v15, 2 }
  0xfa   :  { %v1491_v53 = vsel %vm1490_vm3, %v1486_v32, %v1487_v22  ;;  %v1516_v18 = vsel %vm1490_vm3, %v1513_v45, %v1514_v2 }
  0xfb   :  { %v1493_v29 = vsel %vm1492_vm5, %v2294_v51, %v1491_v53  ;;  %v1517_v42 = vsel %vm1492_vm5, %v2305_v49, %v1516_v18 }
  0xfc   :  { %v1495_v33 = vadd.f32 %v1493_v29, %v1480_v61  ;;  %v1519_v13 = vadd.f32 %v1517_v42, %v1507_v37 }
  0xfe   :  { %v1564_v35 = vclamps-f32 %v1495_v33, 1.0  ;;  %v1565_v60 = vclamps-f32 %v1519_v13, 1.0 }
 0x100   :  { %1498 = vst [vmem:[#allocation6] sm:$0xff] %v1564_v35 }
 0x101   :  { %1522 = vst [vmem:[#allocation6 + $0x8] sm:$0xff] %v1565_v60 }
 0x102   :  { %1533 = dma.vmem_to_hbm [thread:$0]  %s1529_s15, 256, %s1531_s18, [#allocation5]  }
 0x103   :  { %1641 = dma.done.wait [#allocation5], 256  }
 0x104   :  { %1642 = vsyncadd [#allocation5], 4294967040 }
 0x105   :  { %1538 = vsyncpa [#allocation4], 1 }
 0x106   :  { %1539 = vsyncpa [#allocation5], 1 }

</bundles_post_ra>
